<compile_context>
chip_gen: v7x
topology: tpu7x:2x2x1
jax: 0.10.0
libtpu: 0.0.40
codegen_flags: <defaults>
</compile_context>

<pallas_src>
import functools

import jax
import jax.numpy as jnp
from jax import lax
from jax.experimental import pallas as pl
from jax.experimental.pallas import tpu as pltpu

TEMP = 0.05
EPS = 1e-12


def _round_up(n, m):
    return ((n + m - 1) // m) * m


def _pick_tile_b(B, D, C_pad, itemsize, budget_bytes=12 << 20):
    """Largest row tile (multiple of 8, <=1024) whose double-buffered x/out tiles
    plus the resident (double-buffered) weight fit well inside the default scoped
    VMEM on every generation (16 MiB v5e / 32 MiB v6e, v7x)."""
    w_bytes = 2 * C_pad * D * itemsize
    per_row = 2 * itemsize * (D + C_pad)
    tb = (budget_bytes - w_bytes) // per_row
    tb = max(8, min(1024, (tb // 8) * 8))
    return int(min(tb, _round_up(B, 8)))


def _make_kernel(temp):
    inv_temp = 1.0 / temp

    def kernel(x_ref, w_ref, o_ref):
        x = x_ref[...]                         # (TB, D), native dtype
        w = w_ref[...]                         # (Cp, D), native dtype

        # Sum of squares in f32 -> 1 / max(||x||, EPS) via rsqrt(max(sq, EPS^2)).
        xf = x.astype(jnp.float32)
        sq = jnp.sum(xf * xf, axis=-1, keepdims=True)          # (TB, 1)
        inv_norm = lax.rsqrt(jnp.maximum(sq, EPS * EPS))       # (TB, 1)

        # MXU matmul contracting over D with w in native (Cp, D) layout.
        logits = lax.dot_general(
            x, w,
            dimension_numbers=(((1,), (1,)), ((), ())),
            preferred_element_type=jnp.float32)                # (TB, Cp)

        # Normalization is linear -> apply to logits, fused with 1/temp.
        o_ref[...] = (logits * (inv_norm * inv_temp)).astype(o_ref.dtype)

    return kernel


@functools.partial(jax.jit, static_argnames=("temp", "tile_b"))
def res_classifier_mme_forward(x, w, *, temp=TEMP, tile_b=None):
    """x: (B, D), w: (C, D) [nn.Linear.weight layout] -> (B, C)."""
    B, D = x.shape
    C, D2 = w.shape
    assert D == D2, "feature dims must match"

    out_dtype = x.dtype
    itemsize = jnp.dtype(x.dtype).itemsize

    # Pad num_classes to a lane-dense multiple of 128 (zero weight rows).
    C_pad = _round_up(C, 128)
    if C_pad != C:
        w = jnp.pad(w, ((0, C_pad - C), (0, 0)))

    # Row tile: multiple of 8, sized against the per-generation VMEM budget.
    if tile_b is None:
        tile_b = _pick_tile_b(B, D, C_pad, itemsize)
    assert tile_b % 8 == 0

    # Pad batch so it divides evenly into row tiles (zero rows -> zero logits).
    B_pad = _round_up(B, tile_b)
    if B_pad != B:
        x = jnp.pad(x, ((0, B_pad - B), (0, 0)))

    grid = (B_pad // tile_b,)

    cost = pl.CostEstimate(
        flops=int(2 * B_pad * D * C_pad + 3 * B_pad * D),
        transcendentals=int(B_pad),
        bytes_accessed=int(itemsize * (B_pad * D + C_pad * D)
                           + jnp.dtype(out_dtype).itemsize * B_pad * C_pad),
    )

    out = pl.pallas_call(
        _make_kernel(temp),
        out_shape=jax.ShapeDtypeStruct((B_pad, C_pad), out_dtype),
        grid_spec=pltpu.PrefetchScalarGridSpec(
            num_scalar_prefetch=0,
            grid=grid,
            in_specs=[
                pl.BlockSpec((tile_b, D), lambda i: (i, 0)),    # x row tile
                pl.BlockSpec((C_pad, D), lambda i: (0, 0)),     # full weight
            ],
            out_specs=pl.BlockSpec((tile_b, C_pad), lambda i: (i, 0)),
        ),
        compiler_params=pltpu.CompilerParams(
            dimension_semantics=("parallel",),
        ),
        cost_estimate=cost,
    )(x, w)

    # Slice off batch/class padding.
    return out[:B, :C]


def _reference(x, w, temp=TEMP):
    norm = jnp.sqrt(jnp.sum(x.astype(jnp.float32) ** 2, axis=-1, keepdims=True))
    xn = x / jnp.maximum(norm, EPS)
    return (xn @ w.T) / temp


if __name__ == "__main__":
    # Small shapes consistent with the module: batch=8, input_size=256,
    # num_classes=12 (module default num_classes).
    B, D, C = 8, 256, 12

    key = jax.random.PRNGKey(0)
    kx, kw = jax.random.split(key)
    x = jax.random.normal(kx, (B, D), dtype=jnp.float32)
    # weights_init: normal(0.0, 0.1) — deterministic synthetic init.
    w = 0.1 * jax.random.normal(kw, (C, D), dtype=jnp.float32)

    out = res_classifier_mme_forward(x, w)
    out = jax.block_until_ready(out)

    ref = _reference(x, w)
    assert out.shape == (B, C)
    assert jnp.allclose(out, ref, atol=1e-3, rtol=1e-3)

    # Also exercise a multi-tile grid with padding (non-multiple batch).
    B2 = 40
    x2 = jax.random.normal(jax.random.PRNGKey(1), (B2, D), dtype=jnp.float32)
    out2 = jax.block_until_ready(
        res_classifier_mme_forward(x2, w, tile_b=8))
    assert out2.shape == (B2, C)
    assert jnp.allclose(out2, _reference(x2, w), atol=1e-3, rtol=1e-3)

    print("KERNEL_OK")
</pallas_src>

<mosaic_0001>
module attributes {stable_mosaic.version = 11 : i64} {
  func.func @kernel(%arg0: i32, %arg1: memref<8x256xf32, #tpu.memory_space<vmem>>, %arg2: memref<128x256xf32, #tpu.memory_space<vmem>>, %arg3: memref<8x128xf32, #tpu.memory_space<vmem>>) attributes {dimension_semantics = [#tpu.dimension_semantics<parallel>], iteration_bounds = array<i64: 1>, scalar_prefetch = 0 : i64, scratch_operands = 0 : i64, tpu.core_type = #tpu.core_type<tc>, window_params = [{transform_indices = @transform_0, window_bounds = array<i64: 8, 256>}, {pipeline_mode = #tpu.pipeline_mode<synchronous>, transform_indices = @transform_1, window_bounds = array<i64: 128, 256>}, {transform_indices = @transform_2, window_bounds = array<i64: 8, 128>}]} {
    %c0 = arith.constant 0 : index
    %c0_0 = arith.constant 0 : index
    %0 = vector.load %arg1[%c0, %c0_0] : memref<8x256xf32, #tpu.memory_space<vmem>>, vector<8x256xf32>
    %c0_1 = arith.constant 0 : index
    %c0_2 = arith.constant 0 : index
    %1 = vector.load %arg2[%c0_1, %c0_2] : memref<128x256xf32, #tpu.memory_space<vmem>>, vector<128x256xf32>
    %2 = arith.mulf %0, %0 : vector<8x256xf32>
    %cst = arith.constant dense<0.000000e+00> : vector<8xf32>
    %3 = vector.multi_reduction <add>, %2, %cst [1] : vector<8x256xf32> to vector<8xf32>
    %4 = vector.shape_cast %3 : vector<8xf32> to vector<8x1xf32>
    %cst_3 = arith.constant 1.000000e-24 : f32
    %5 = vector.broadcast %cst_3 : f32 to vector<8x1xf32>
    %6 = arith.maximumf %4, %5 : vector<8x1xf32>
    %7 = math.rsqrt %6 : vector<8x1xf32>
    %cst_4 = arith.constant dense<0.000000e+00> : vector<8x128xf32>
    %8 = tpu.matmul %0, %1, %cst_4 {dimension_numbers = #tpu.dot_dimension_numbers<[1], [1], [0], [0], [0, 0, 1, 0], [], []>} : vector<8x256xf32>, vector<128x256xf32>, vector<8x128xf32> -> vector<8x128xf32>
    %cst_5 = arith.constant 2.000000e+01 : f32
    %9 = vector.broadcast %cst_5 : f32 to vector<8x1xf32>
    %10 = arith.mulf %7, %9 : vector<8x1xf32>
    %11 = vector.broadcast %10 : vector<8x1xf32> to vector<8x128xf32>
    %12 = arith.mulf %8, %11 : vector<8x128xf32>
    %c0_6 = arith.constant 0 : index
    %c0_7 = arith.constant 0 : index
    %13 = vector.load %arg3[%c0_6, %c0_7] : memref<8x128xf32, #tpu.memory_space<vmem>>, vector<8x128xf32>
    tpu.vector_store %arg3[%c0_6, %c0_7], %12 {strides = array<i32>} : memref<8x128xf32, #tpu.memory_space<vmem>>, vector<8x128xf32>,
    return
  }
  func.func @transform_0(%arg0: i32) -> (i32, i32) {
    %c0_i32 = arith.constant 0 : i32
    %c0_i32_0 = arith.constant 0 : i32
    return %arg0, %c0_i32 : i32, i32
  }
  func.func @transform_1(%arg0: i32) -> (i32, i32) {
    %c0_i32 = arith.constant 0 : i32
    %c0_i32_0 = arith.constant 0 : i32
    %c0_i32_1 = arith.constant 0 : i32
    return %c0_i32, %c0_i32_0 : i32, i32
  }
  func.func @transform_2(%arg0: i32) -> (i32, i32) {
    %c0_i32 = arith.constant 0 : i32
    %c0_i32_0 = arith.constant 0 : i32
    return %arg0, %c0_i32 : i32, i32
  }
}

</mosaic_0001>

<bundles_post_ra>
// kernel: res_classifier_mme_forward.1
= control target key start
LH: loop header
LB: loop body
LE: loop exit
PB: predicated region body
PF: predicated region fallthrough
CT: control target
= control target key end

     0   :  { %s329_s0 = inlined_call_operand.vmem [shape: f32[8,256], index: 0, kind: input, shape index: {}]   ;;  %s330_s1 = inlined_call_operand.vmem [shape: f32[128,256], index: 1, kind: input, shape index: {}]   ;;  %s331_s2 = inlined_call_operand.hbm [shape: f32[8,128], index: 2, kind: output, shape index: {}]  }
   0x1   :  { %v15_v0 = vld [vmem:[%s330_s1 + $0x8] sm:$0xff]  ;;  %v17_v1 = vld [vmem:[%s330_s1 + $0x18] sm:$0xff]  ;;  %v14_v2 = vld [vmem:[%s330_s1] sm:$0xff] }
   0x2   :  { %v140_v3 = vpack.c.bf16 %v17_v1, %v15_v0  ;;  %v16_v4 = vld [vmem:[%s330_s1 + $0x10] sm:$0xff]  ;;  %v19_v5 = vld [vmem:[%s330_s1 + $0x28] sm:$0xff]  ;;  %v21_v6 = vld [vmem:[%s330_s1 + $0x38] sm:$0xff] }
   0x3   :  { %v142_v7 = vpack.c.bf16 %v16_v4, %v14_v2  ;;  %v144_v8 = vpack.c.bf16 %v21_v6, %v19_v5  ;;  %v18_v9 = vld [vmem:[%s330_s1 + $0x20] sm:$0xff]  ;;  %v20_v10 = vld [vmem:[%s330_s1 + $0x30] sm:$0xff]  ;;  %v23_v11 = vld [vmem:[%s330_s1 + $0x48] sm:$0xff] }
   0x4   :  { %141 = vmatprep.subr.bf16.mxu0 %v140_v3  ;;  %v25_v12 = vld [vmem:[%s330_s1 + $0x58] sm:$0xff]  ;;  %v146_v13 = vpack.c.bf16 %v20_v10, %v18_v9  ;;  %v13_v15 = vld [vmem:[%s329_s0 + $0x8] sm:$0xff]  ;;  %v12_v17 = vld [vmem:[%s329_s0] sm:$0xff] }
   0x5   :  { %143 = vmatpush1.bf16.xpose.msra.mxu0 %v142_v7  ;;  %v148_v14 = vpack.c.bf16 %v25_v12, %v23_v11  ;;  %v47_v16 = vmul.f32 %v13_v15, %v13_v15  ;;  %117 = vmatprep.mubr.f32.mxu0 %v13_v15 }
   0x6   :  { %145 = vmatprep.subr.bf16.mxu0 %v144_v8 }
   0x7   :  { %7 = vsyncpa [#allocation3], 0  ;;  %v46_v18 = vmul.f32 %v12_v17, %v12_v17  ;;  %v22_v19 = vld [vmem:[%s330_s1 + $0x40] sm:$0xff]  ;;  %v24_v20 = vld [vmem:[%s330_s1 + $0x50] sm:$0xff]  ;;  %s199_s19 = smov [#allocation2]  }
   0x8   :  { %v27_v21 = vld [vmem:[%s330_s1 + $0x68] sm:$0xff]  ;;  %v29_v22 = vld [vmem:[%s330_s1 + $0x78] sm:$0xff]  ;;  %v150_v24 = vpack.c.bf16 %v24_v20, %v22_v19  ;;  %v26_v26 = vld [vmem:[%s330_s1 + $0x60] sm:$0xff]  ;;  %s132_s20 = sshll.u32 %s199_s19, 4  ;;  %s133_s20 = int_to_ptr.vmem [resolvable:$true] %s132_s20 }
   0x9   :  { %v48_v23 = vadd.f32 %v47_v16, %v46_v18  ;;  %v152_v25 = vpack.c.bf16 %v29_v22, %v27_v21  ;;  %v28_v27 = vld [vmem:[%s330_s1 + $0x70] sm:$0xff]  ;;  %v31_v28 = vld [vmem:[%s330_s1 + $0x88] sm:$0xff]  ;;  %v33_v29 = vld [vmem:[%s330_s1 + $0x98] sm:$0xff]  ;;  %s175_s21 = scalar_lea.vmem %s133_s20, 128  ;;  %p180_p1 = scmp.lt.s32.totalorder %s133_s20, %s133_s20 }
   0xa   :  { %v154_v30 = vpack.c.bf16 %v28_v27, %v26_v26  ;;  %v156_v31 = vpack.c.bf16 %v33_v29, %v31_v28  ;;  %v30_v32 = vld [vmem:[%s330_s1 + $0x80] sm:$0xff]  ;;  %v32_v33 = vld [vmem:[%s330_s1 + $0x90] sm:$0xff]  ;;  %v35_v34 = vld [vmem:[%s330_s1 + $0xa8] sm:$0xff]  ;;  %p176_p0 = scmp.ne.s32.totalorder %s133_s20, %s175_s21  ;;  %p181_p2 = scmp.lt.s32.totalorder %s175_s21, %s175_s21 }
   0xb   :  { %49 = vadd.xlane.f32.xlu0 %v48_v23  ;;  %v37_v35 = vld [vmem:[%s330_s1 + $0xb8] sm:$0xff]  ;;  %v158_v36 = vpack.c.bf16 %v32_v33, %v30_v32  ;;  %v34_v38 = vld [vmem:[%s330_s1 + $0xa0] sm:$0xff]  ;;  %v36_v39 = vld [vmem:[%s330_s1 + $0xb0] sm:$0xff] }
   0xc   :  { %v160_v37 = vpack.c.bf16 %v37_v35, %v35_v34  ;;  %v39_v40 = vld [vmem:[%s330_s1 + $0xc8] sm:$0xff]  ;;  %v41_v41 = vld [vmem:[%s330_s1 + $0xd8] sm:$0xff]  ;;  %v162_v42 = vpack.c.bf16 %v36_v39, %v34_v38  ;;  %v38_v44 = vld [vmem:[%s330_s1 + $0xc0] sm:$0xff]  ;;  %p182_p3 = por %p181_p2, %p180_p1 }
   0xd   :  { %147 = vmatpush1.bf16.xpose.msra.mxu0 %v146_v13  ;;  %v164_v43 = vpack.c.bf16 %v41_v41, %v39_v40  ;;  %v40_v45 = vld [vmem:[%s330_s1 + $0xd0] sm:$0xff]  ;;  %v43_v46 = vld [vmem:[%s330_s1 + $0xe8] sm:$0xff]  ;;  %v45_v47 = vld [vmem:[%s330_s1 + $0xf8] sm:$0xff] }
   0xe   :  { %149 = vmatprep.subr.bf16.mxu0 %v148_v14  ;;  %v166_v48 = vpack.c.bf16 %v40_v45, %v38_v44  ;;  %v168_v49 = vpack.c.bf16 %v45_v47, %v43_v46  ;;  %v42_v50 = vld [vmem:[%s330_s1 + $0xe0] sm:$0xff]  ;;  %v44_v51 = vld [vmem:[%s330_s1 + $0xf0] sm:$0xff]  ;;  %p183_p4 = pnand %p182_p3, %p176_p0 }
   0xf   :  { %v170_v52 = vpack.c.bf16 %v44_v51, %v42_v50 }
  0x15   :  { %151 = vmatpush1.bf16.xpose.msra.mxu0 %v150_v24 }
  0x16   :  { %153 = vmatprep.subr.bf16.mxu0 %v152_v25 }
  0x1d   :  { %155 = vmatpush1.bf16.xpose.msra.mxu0 %v154_v30 }
  0x1e   :  { %157 = vmatprep.subr.bf16.mxu0 %v156_v31 }
  0x25   :  { %159 = vmatpush1.bf16.xpose.msra.mxu0 %v158_v36 }
  0x26   :  { %161 = vmatprep.subr.bf16.mxu0 %v160_v37 }
  0x2d   :  { %163 = vmatpush1.bf16.xpose.msra.mxu0 %v162_v42 }
  0x2e   :  { %165 = vmatprep.subr.bf16.mxu0 %v164_v43 }
  0x35   :  { %167 = vmatpush1.bf16.xpose.msra.mxu0 %v166_v48 }
  0x36   :  { %169 = vmatprep.subr.bf16.mxu0 %v168_v49 }
  0x3d   :  { %171 = vmatpush1.bf16.xpose.msra.mxu0 %v170_v52 }
  0x44   :  { %118 = vmatmul.mubr.f32.vlgmr.msra.gmra.mrb[0].mxu0 %v12_v17 }
  0x98   :  { %v50_v53 = vpop.xlane.xlu0 %49 }
  0x99   :  { %v51_v54 = vmax.f32 %v50_v53, 1e-24 }
  0x9b   :  { %173 = vrsqrt.f32 %v51_v54 }
  0xa5   :  { %v174_v55 = vpop.eup %173 }
  0xa6   :  { %v123_v56 = vmul.f32 20.0, %v174_v55 }
 0x117   :  { %v119_v57 = vpop.f32.mrb[0].mxu0 }
 0x118   :  { %v124_v58 = vmul.f32 %v123_v56, %v119_v57  ;;  %v121_v59 = vpop.f32.mrb[1].mxu0 }
 0x11a   :  { %125 = vst [vmem:[#allocation2] sm:$0xff] %v124_v58 }
 0x11b   :  { %186 = shalt.err (!%p183_p4)
}
 0x11c   :  { %s187_s23 = scalar_lea.hbm %s331_s2, 128 }
 0x11d   :  { %p188_p5 = scmp.ne.s32.totalorder %s331_s2, %s187_s23  ;;  %p191_p6 = scmp.lt.u32.totalorder %s187_s23, %s331_s2 }
 0x11f   :  { %p193_p7 = pnand %p191_p6, %p188_p5 }
 0x121   :  { %196 = shalt.err (!%p193_p7)
}
 0x122   :  { %135 = dma.vmem_to_hbm [thread:$0]  %s133_s20, 128, %s331_s2, [#allocation3]  }
 0x123   :  { %197 = dma.done.wait [#allocation3], 128  }
 0x124   :  { %198 = vsyncadd [#allocation3], 4294967168 }
 0x125   :  { %139 = vsyncpa [#allocation3], 1 }

</bundles_post_ra>
